<compile_context>
chip_gen: v7x
topology: tpu7x:2x2x1
jax: 0.10.0
libtpu: 0.0.40
codegen_flags: <defaults>
</compile_context>

<pallas_src>
import functools

import jax
import jax.numpy as jnp
from jax import lax
from jax.experimental import pallas as pl
from jax.experimental.pallas import tpu as pltpu


def _round_up(x, m):
    return ((x + m - 1) // m) * m


# ---------------------------------------------------------------------------
# Kernels: per-row logsumexp of the logits.
# ---------------------------------------------------------------------------

def _lse_single_tile_kernel(logits_ref, out_ref):
    """Fast path: the whole class axis fits in one lane-dense tile."""
    x = logits_ref[...].astype(jnp.float32)
    m = jnp.max(x, axis=-1, keepdims=True)
    out_ref[...] = m + jnp.log(jnp.sum(jnp.exp(x - m), axis=-1, keepdims=True))


def _lse_streaming_kernel(logits_ref, out_ref, m_ref, l_ref, *,
                          block_c, c_valid, mask_last_tile):
    """Online log-sum-exp over class tiles (last, "arbitrary" grid axis)."""
    j = pl.program_id(1)
    last = pl.num_programs(1) - 1

    @pl.when(j == 0)
    def _init():
        m_ref[...] = jnp.full(m_ref.shape, -jnp.inf, dtype=jnp.float32)
        l_ref[...] = jnp.zeros(l_ref.shape, dtype=jnp.float32)

    def _update(x):
        m_old = m_ref[...]
        m_new = jnp.maximum(m_old, jnp.max(x, axis=-1, keepdims=True))
        l_ref[...] = (l_ref[...] * jnp.exp(m_old - m_new)
                      + jnp.sum(jnp.exp(x - m_new), axis=-1, keepdims=True))
        m_ref[...] = m_new

    x = logits_ref[...].astype(jnp.float32)

    if mask_last_tile:
        # Only the last class tile has padded lanes: pay the compare+select
        # only there.  Threshold is scalar-adjusted (scalar unit), compared
        # against the loop-invariant local lane iota.
        @pl.when(j != last)
        def _full():
            _update(x)

        @pl.when(j == last)
        def _ragged():
            rem = c_valid - j * block_c
            lane = lax.broadcasted_iota(jnp.int32, x.shape, 1)
            _update(jnp.where(lane < rem, x, -jnp.inf))
    else:
        _update(x)

    @pl.when(j == last)
    def _finalize():
        out_ref[...] = m_ref[...] + jnp.log(l_ref[...])


# ---------------------------------------------------------------------------
# Wrapper
# ---------------------------------------------------------------------------

def _row_logsumexp(logits, *, block_rows=None, block_c=None):
    """Per-row logsumexp of a (N, C) logits array, f32, shape (N,)."""
    n, c = logits.shape
    itemsize = jnp.dtype(logits.dtype).itemsize
    row_mult = 16 if itemsize <= 2 else 8  # sublane packing: bf16 needs 16

    # ---- class tile: whole vocab for modest C, fixed lane-dense tile otherwise
    if block_c is None:
        block_c = c if c <= 8192 else 4096
    if block_c >= c:
        block_c = c
    else:
        block_c = max(128, (block_c // 128) * 128)
    grid_c = pl.cdiv(c, block_c)

    # ---- row tile: ~4 MiB of logits per grid step, (8,128)-aligned
    if block_rows is None:
        target_bytes = 4 * 1024 * 1024
        block_rows = (target_bytes // (block_c * itemsize)) // row_mult * row_mult
        block_rows = max(row_mult, min(block_rows, 1024))
        block_rows = min(block_rows, _round_up(n, row_mult))
        # v7x megacore: keep >=2 "parallel" row tiles when the batch allows it.
        if n > row_mult and block_rows >= n:
            block_rows = max(row_mult, _round_up(-(-n // 2), row_mult))
        # Keep a few flattened (rows x classes) pipeline steps for DMA overlap.
        while block_rows > row_mult and pl.cdiv(n, block_rows) * grid_c < 4:
            block_rows = max(row_mult, (block_rows // 2) // row_mult * row_mult)
    else:
        block_rows = max(row_mult, _round_up(block_rows, row_mult))
    grid_rows = pl.cdiv(n, block_rows)

    out_shape = jax.ShapeDtypeStruct((n, 1), jnp.float32)
    vmem_limit = 48 * 1024 * 1024

    if grid_c == 1:
        lse = pl.pallas_call(
            _lse_single_tile_kernel,
            out_shape=out_shape,
            grid_spec=pltpu.PrefetchScalarGridSpec(
                num_scalar_prefetch=0,
                grid=(grid_rows,),
                in_specs=[pl.BlockSpec((block_rows, block_c), lambda i: (i, 0))],
                out_specs=pl.BlockSpec((block_rows, 1), lambda i: (i, 0)),
            ),
            compiler_params=pltpu.CompilerParams(
                dimension_semantics=("parallel",),
                vmem_limit_bytes=vmem_limit,
            ),
        )(logits)
    else:
        kernel = functools.partial(
            _lse_streaming_kernel, block_c=block_c, c_valid=c,
            mask_last_tile=(c % block_c != 0))
        lse = pl.pallas_call(
            kernel,
            out_shape=out_shape,
            grid_spec=pltpu.PrefetchScalarGridSpec(
                num_scalar_prefetch=0,
                grid=(grid_rows, grid_c),
                in_specs=[pl.BlockSpec((block_rows, block_c),
                                       lambda i, j: (i, j))],
                out_specs=pl.BlockSpec((block_rows, 1), lambda i, j: (i, 0)),
                scratch_shapes=[
                    pltpu.VMEM((block_rows, 1), jnp.float32),  # running max
                    pltpu.VMEM((block_rows, 1), jnp.float32),  # running sum-exp
                ],
            ),
            compiler_params=pltpu.CompilerParams(
                dimension_semantics=("parallel", "arbitrary"),
                vmem_limit_bytes=vmem_limit,
            ),
        )(logits)

    return lse[:, 0]


def cross_entropy_loss(logits, targets, *, block_rows=None, block_c=None):
    """Mean cross-entropy; logits (N, C) float, targets (N,) integer labels."""
    n, _ = logits.shape
    lse = _row_logsumexp(logits, block_rows=block_rows, block_c=block_c)
    tgt = targets.astype(jnp.int32).reshape(n, 1)
    # Tiny N-element gather outside the streamed N*C loop (perf review).
    # TODO(synk): PyTorch's ignore_index=-100 / class weights are not handled;
    # the spec module uses a default nn.CrossEntropyLoss with in-range labels.
    tl = jnp.take_along_axis(logits, tgt, axis=-1)[:, 0].astype(jnp.float32)
    return jnp.sum(lse - tl) / jnp.float32(n)


class CE:
    """JAX/Pallas port of src/losses/CE.py::CE (nn.CrossEntropyLoss, mean)."""

    def __init__(self, unnormalizer=None, path=None):
        # unnormalizer / path are unused by the PyTorch forward as well.
        pass

    def __call__(self, logits, targets, hotvector):
        # The PyTorch forward ignores `targets` and uses `hotvector` as the
        # integer class labels for CrossEntropyLoss.
        return cross_entropy_loss(logits, hotvector)


def _reference_ce(logits, labels):
    lse = jax.nn.logsumexp(logits.astype(jnp.float32), axis=-1)
    tl = jnp.take_along_axis(logits.astype(jnp.float32),
                             labels[:, None], axis=-1)[:, 0]
    return jnp.mean(lse - tl)


if __name__ == "__main__":
    key = jax.random.PRNGKey(0)
    k1, k2, k3, k4, k5, k6 = jax.random.split(key, 6)

    # --- check 1: small shape from the module spec (single-tile fast path) ---
    N, C = 8, 32
    logits = jax.random.normal(k1, (N, C), dtype=jnp.float32)
    hotvector = jax.random.randint(k2, (N,), 0, C, dtype=jnp.int32)
    targets = hotvector  # unused by forward, mirrors the PyTorch signature

    loss_fn = CE(unnormalizer=None, path=None)
    loss = jax.block_until_ready(loss_fn(logits, targets, hotvector))
    ref = _reference_ce(logits, hotvector)
    assert jnp.allclose(loss, ref, rtol=1e-5, atol=1e-5), (loss, ref)

    # --- check 2: streaming online-LSE path with ragged rows AND ragged
    #     classes (no wrapper padding; last-tile mask + post-hoc row slicing) ---
    N2, C2 = 20, 300
    logits2 = jax.random.normal(k3, (N2, C2), dtype=jnp.float32)
    hot2 = jax.random.randint(k4, (N2,), 0, C2, dtype=jnp.int32)
    loss2 = jax.block_until_ready(
        cross_entropy_loss(logits2, hot2, block_rows=8, block_c=128))
    ref2 = _reference_ce(logits2, hot2)
    assert jnp.allclose(loss2, ref2, rtol=1e-5, atol=1e-5), (loss2, ref2)

    # --- check 3: default heuristics, bf16 logits, non-tile-aligned batch ---
    N3, C3 = 100, 300
    logits3 = jax.random.normal(k5, (N3, C3), dtype=jnp.float32).astype(jnp.bfloat16)
    hot3 = jax.random.randint(k6, (N3,), 0, C3, dtype=jnp.int32)
    loss3 = jax.block_until_ready(cross_entropy_loss(logits3, hot3))
    ref3 = _reference_ce(logits3, hot3)
    assert jnp.allclose(loss3, ref3, rtol=1e-4, atol=1e-4), (loss3, ref3)

    print("KERNEL_OK")
</pallas_src>

<mosaic_0001>
module attributes {stable_mosaic.version = 11 : i64} {
  func.func @_lse_single_tile_kernel(%arg0: i32, %arg1: memref<8x32xf32, #tpu.memory_space<vmem>>, %arg2: memref<8x1xf32, #tpu.memory_space<vmem>>) attributes {dimension_semantics = [#tpu.dimension_semantics<parallel>], iteration_bounds = array<i64: 1>, scalar_prefetch = 0 : i64, scratch_operands = 0 : i64, tpu.core_type = #tpu.core_type<tc>, window_params = [{transform_indices = @transform_0, window_bounds = array<i64: 8, 32>}, {transform_indices = @transform_1, window_bounds = array<i64: 8, 1>}]} {
    %c0 = arith.constant 0 : index
    %c0_0 = arith.constant 0 : index
    %0 = vector.load %arg1[%c0, %c0_0] : memref<8x32xf32, #tpu.memory_space<vmem>>, vector<8x32xf32>
    %cst = arith.constant dense<0xFF800000> : vector<8xf32>
    %1 = vector.multi_reduction <maximumf>, %0, %cst [1] : vector<8x32xf32> to vector<8xf32>
    %2 = vector.shape_cast %1 : vector<8xf32> to vector<8x1xf32>
    %3 = vector.broadcast %2 : vector<8x1xf32> to vector<8x32xf32>
    %4 = arith.subf %0, %3 : vector<8x32xf32>
    %5 = math.exp %4 : vector<8x32xf32>
    %cst_1 = arith.constant dense<0.000000e+00> : vector<8xf32>
    %6 = vector.multi_reduction <add>, %5, %cst_1 [1] : vector<8x32xf32> to vector<8xf32>
    %7 = vector.shape_cast %6 : vector<8xf32> to vector<8x1xf32>
    %8 = math.log %7 : vector<8x1xf32>
    %9 = arith.addf %2, %8 : vector<8x1xf32>
    %c0_2 = arith.constant 0 : index
    %c0_3 = arith.constant 0 : index
    %10 = vector.load %arg2[%c0_2, %c0_3] : memref<8x1xf32, #tpu.memory_space<vmem>>, vector<8x1xf32>
    tpu.vector_store %arg2[%c0_2, %c0_3], %9 {strides = array<i32>} : memref<8x1xf32, #tpu.memory_space<vmem>>, vector<8x1xf32>,
    return
  }
  func.func @transform_0(%arg0: i32) -> (i32, i32) {
    %c0_i32 = arith.constant 0 : i32
    %c0_i32_0 = arith.constant 0 : i32
    return %arg0, %c0_i32 : i32, i32
  }
  func.func @transform_1(%arg0: i32) -> (i32, i32) {
    %c0_i32 = arith.constant 0 : i32
    %c0_i32_0 = arith.constant 0 : i32
    return %arg0, %c0_i32 : i32, i32
  }
}

</mosaic_0001>

<bundles_post_ra>
// kernel: tpu_custom_call.1
= control target key start
LH: loop header
LB: loop body
LE: loop exit
PB: predicated region body
PF: predicated region fallthrough
CT: control target
= control target key end

     0   :  { %6 = vsyncpa [#allocation3], 0  ;;  %s70_s6 = smov [#allocation2]   ;;  %s96_s0 = inlined_call_operand.hbm [shape: f32[8,32], index: 0, kind: input, shape index: {}]   ;;  %s97_s1 = inlined_call_operand.vmem [shape: f32[8,1], index: 1, kind: output, shape index: {}]  }
   0x1   :  { %s13_s7 = sshll.u32 %s70_s6, 4  ;;  %s46_s10 = scalar_lea.hbm %s96_s0, 128  ;;  %s14_s7 = int_to_ptr.vmem [resolvable:$true] %s13_s7 }
   0x2   :  { %p47_p0 = scmp.ne.s32.totalorder %s96_s0, %s46_s10  ;;  %p50_p1 = scmp.lt.u32.totalorder %s46_s10, %s96_s0 }
   0x4   :  { %p52_p2 = pnand %p50_p1, %p47_p0 }
   0x6   :  { %55 = shalt.err (!%p52_p2)
}
   0x7   :  { %s56_s15 = scalar_lea.vmem %s14_s7, 128  ;;  %p61_p4 = scmp.lt.s32.totalorder %s14_s7, %s14_s7 }
   0x8   :  { %p57_p3 = scmp.ne.s32.totalorder %s14_s7, %s56_s15  ;;  %p62_p5 = scmp.lt.s32.totalorder %s56_s15, %s56_s15 }
   0xa   :  { %p63_p6 = por %p62_p5, %p61_p4 }
   0xc   :  { %p64_p7 = pnand %p63_p6, %p57_p3 }
   0xe   :  { %67 = shalt.err (!%p64_p7)
}
   0xf   :  { %16 = dma.hbm_to_vmem [thread:$0]  %s96_s0, 128, %s14_s7, [#allocation3]  }
  0x10   :  { %68 = dma.done.wait [#allocation3], 128  }
  0x11   :  { %69 = vsyncadd [#allocation3], 4294967168  ;;  %vm21_vm0 = vcmask 261120   ;;  %v20_v0 = vld [vmem:[#allocation2] sm:$0xff]  ;;  %vm34_vm1 = vcmask 7168  }
  0x12   :  { %v22_v1 = vsel %vm21_vm0, %v20_v0, -inf }
  0x13   :  { %23 = vmax.xlane.f32.xlu0 %v22_v1 }
  0xa0   :  { %v24_v2 = vpop.xlane.xlu0 %23 }
  0xa1   :  { %v25_v3 = vsub.f32 %v20_v0, %v24_v2 }
  0xa3   :  { %v26_v4 = vmul.f32 1.442695, %v25_v3 }
  0xa5   :  { %42 = vpow2.f32 %v26_v4 }
  0xaf   :  { %v43_v5 = vpop.eup %42 }
  0xb0   :  { %v28_v6 = vsel %vm21_vm0, %v43_v5, 0.0 }
  0xb1   :  { %29 = vadd.xlane.f32.xlu0 %v28_v6 }
 0x13e   :  { %v30_v7 = vpop.xlane.xlu0 %29 }
 0x13f   :  { %44 = vlog2.f32 %v30_v7 }
 0x149   :  { %v45_v8 = vpop.eup %44 }
 0x14a   :  { %v32_v9 = vmul.f32 0.6931472, %v45_v8 }
 0x14c   :  { %v33_v10 = vadd.f32 %v32_v9, %v24_v2 }
 0x14e   :  { %35 = vst.msk [vmem:[%s97_s1] sm:$0xff] %vm34_vm1, %v33_v10 }
 0x14f   :  { %40 = vsyncpa [#allocation3], 1 }

</bundles_post_ra>
